<compile_context>
chip_gen: v7x
topology: tpu7x:2x2x1
jax: 0.10.0
libtpu: 0.0.40
codegen_flags: <defaults>
</compile_context>

<pallas_src>
import functools

import jax
import jax.numpy as jnp
from jax.experimental import pallas as pl
from jax.experimental.pallas import tpu as pltpu

_LANE = 128        # lane width: batch tiles are multiples of this
_SUBLANE = 8       # f32 sublane tile: padded class-row count is a multiple of this
_NEG_BIG = -1e30   # effective -inf for padded class rows (exp underflows to 0 exactly)


def _round_up(a, m):
    return (a + m - 1) // m * m


def _mlp_logsoftmax_kernel(n_layers, *refs):
    """One batch tile of the whole forward pass, batch-on-lanes layout.

    refs = (x_ref, w_0, b_0, w_1, b_1, ..., w_{L-1}, b_{L-1}, out_ref)
      x_ref   : (2, TB)            input features on sublanes, batch on lanes
      w_i     : (out_i, in_i)      PyTorch nn.Linear layout
      b_i     : (out_i, 1)
      out_ref : (out_pad, TB)      out_pad = n_class rounded up to 8 sublanes;
                                   padded rows carry a -1e30 bias so they vanish
                                   from the log-sum-exp exactly.
    """
    x_ref = refs[0]
    out_ref = refs[-1]
    param_refs = refs[1:-1]

    x = x_ref[...].astype(jnp.float32)          # (2, TB)

    # Layer 0: in_features == 2 -> two VPU broadcast-FMAs, no MXU round-trip.
    w0 = param_refs[0][...]                     # (w, 2)
    b0 = param_refs[1][...]                     # (w, 1)
    h = w0[:, 0:1] * x[0:1, :] + w0[:, 1:2] * x[1:2, :] + b0
    if n_layers > 1:
        h = jnp.maximum(h, 0.0)                 # ReLU (hidden layer)

    # Hidden layers + final (class-padded) projection on the MXU, f32 accumulate.
    # N = TB is lane-dense, so the MXU pass is fully utilized.
    for layer in range(1, n_layers):
        w = param_refs[2 * layer][...]          # (out, in)
        b = param_refs[2 * layer + 1][...]      # (out, 1)
        h = jnp.dot(w, h, preferred_element_type=jnp.float32) + b
        if layer != n_layers - 1:
            h = jnp.maximum(h, 0.0)

    # log_softmax over the (padded) class axis = sublane axis 0.
    # Only out_pad (=8 for n_class<=8) exps per sample instead of 128.
    m = jnp.max(h, axis=0, keepdims=True)       # (1, TB)
    s = h - m
    lse = jnp.log(jnp.sum(jnp.exp(s), axis=0, keepdims=True))
    out_ref[...] = (s - lse).astype(out_ref.dtype)


def dxw_mclassnet_forward(x, params, n_class, *, batch_tile=2048):
    """x: (B, 2) float32.  params: list of (W (out,in), b (out,1)) tuples
    (PyTorch nn.Linear layout).  Returns (B, n_class) log-probabilities."""
    n_layers = len(params)
    B = x.shape[0]
    in_feats = x.shape[1]

    # ---- pad final layer's class rows up to a multiple of 8 sublanes ----------
    w_last, b_last = params[-1]
    out_pad = _round_up(n_class, _SUBLANE)
    w_pad = jnp.zeros((out_pad, w_last.shape[1]), w_last.dtype).at[:n_class, :].set(w_last)
    b_pad = jnp.full((out_pad, 1), _NEG_BIG, b_last.dtype).at[:n_class, :].set(b_last)
    padded_params = list(params[:-1]) + [(w_pad, b_pad)]

    # ---- batch tiling (batch on lanes -> tiles are multiples of 128) ----------
    b128 = _round_up(B, _LANE)
    tb = _round_up(min(batch_tile, b128), _LANE)
    if b128 >= 2 * _LANE:
        # keep at least 2 grid steps so the "parallel" axis can use both v7x TCs
        tb = min(tb, _round_up(pl.cdiv(b128, 2), _LANE))
    b_rows = _round_up(B, tb)
    grid = (b_rows // tb,)

    # transpose + pad input to (2, b_rows): features on sublanes, batch on lanes
    x_t = jnp.zeros((in_feats, b_rows), x.dtype).at[:, :B].set(x.T)

    flat_params = []
    for w_i, b_i in padded_params:
        flat_params.append(w_i)
        flat_params.append(b_i)

    # x/out tiles stream with the grid; weights/biases have constant index_maps
    # so Pallas DMAs them once and keeps them resident in VMEM across grid steps.
    in_specs = [pl.BlockSpec((in_feats, tb), lambda i: (0, i))]
    for p in flat_params:
        in_specs.append(pl.BlockSpec(p.shape, lambda i: (0, 0)))
    out_specs = pl.BlockSpec((out_pad, tb), lambda i: (0, i))

    # ---- cost estimate for the XLA scheduler ----------------------------------
    flops = sum(2 * b_rows * w_i.shape[0] * w_i.shape[1] for w_i, _ in padded_params)
    transcendentals = b_rows * (out_pad + 1)      # exp per padded class row + log per sample
    bytes_accessed = (x_t.size * x_t.dtype.itemsize
                      + b_rows * out_pad * 4
                      + sum(p.size * p.dtype.itemsize for p in flat_params))

    kernel = functools.partial(_mlp_logsoftmax_kernel, n_layers)

    out = pl.pallas_call(
        kernel,
        out_shape=jax.ShapeDtypeStruct((out_pad, b_rows), jnp.float32),
        grid=grid,
        in_specs=in_specs,
        out_specs=out_specs,
        compiler_params=pltpu.CompilerParams(
            dimension_semantics=("parallel",),     # shard batch tiles across TCs (v7x)
            vmem_limit_bytes=32 * 1024 * 1024,     # safe on v5e/v6e/v7x; footprint is tiny
        ),
        cost_estimate=pl.CostEstimate(
            flops=flops,
            transcendentals=transcendentals,
            bytes_accessed=bytes_accessed,
        ),
    )(x_t, *flat_params)

    # strip class padding / batch padding and transpose back to (B, n_class)
    return out[:n_class, :B].T


def init_params(key, d=3, w=32, n_class=3):
    """Deterministic init mirroring nn.Linear defaults (uniform +-1/sqrt(fan_in)),
    weights stored in PyTorch layout (out_features, in_features), biases (out, 1)."""
    dims = [2] + [w] * (d - 1) + [n_class]
    params = []
    for i in range(d):
        fan_in, fan_out = dims[i], dims[i + 1]
        key, kw, kb = jax.random.split(key, 3)
        bound = 1.0 / jnp.sqrt(jnp.float32(fan_in))
        W = jax.random.uniform(kw, (fan_out, fan_in), jnp.float32, -bound, bound)
        b = jax.random.uniform(kb, (fan_out, 1), jnp.float32, -bound, bound)
        params.append((W, b))
    return params


def reference_forward(x, params):
    """Pure-JAX reference for sanity checking."""
    h = x
    for i, (W, b) in enumerate(params):
        h = h @ W.T + b[:, 0]
        if i != len(params) - 1:
            h = jnp.maximum(h, 0.0)
    return jax.nn.log_softmax(h, axis=1)


if __name__ == "__main__":
    key = jax.random.PRNGKey(0)
    d, w, n_class = 3, 32, 3
    batch = 8

    kx, kp = jax.random.split(key)
    x = jax.random.normal(kx, (batch, 2), jnp.float32)
    params = init_params(kp, d=d, w=w, n_class=n_class)

    out = dxw_mclassnet_forward(x, params, n_class)
    out = jax.block_until_ready(out)

    ref = reference_forward(x, params)
    assert out.shape == (batch, n_class)
    assert jnp.allclose(out, ref, atol=1e-5, rtol=1e-5), "mismatch vs JAX reference"

    print("KERNEL_OK")
</pallas_src>

<mosaic_0001>
module attributes {stable_mosaic.version = 11 : i64} {
  func.func @_mlp_logsoftmax_kernel(%arg0: i32, %arg1: memref<2x128xf32, #tpu.memory_space<vmem>>, %arg2: memref<32x2xf32, #tpu.memory_space<vmem>>, %arg3: memref<32x1xf32, #tpu.memory_space<vmem>>, %arg4: memref<32x32xf32, #tpu.memory_space<vmem>>, %arg5: memref<32x1xf32, #tpu.memory_space<vmem>>, %arg6: memref<8x32xf32, #tpu.memory_space<vmem>>, %arg7: memref<8x1xf32, #tpu.memory_space<vmem>>, %arg8: memref<8x128xf32, #tpu.memory_space<vmem>>) attributes {dimension_semantics = [#tpu.dimension_semantics<parallel>], iteration_bounds = array<i64: 1>, scalar_prefetch = 0 : i64, scratch_operands = 0 : i64, tpu.core_type = #tpu.core_type<tc>, window_params = [{transform_indices = @transform_0, window_bounds = array<i64: 2, 128>}, {pipeline_mode = #tpu.pipeline_mode<synchronous>, transform_indices = @transform_1, window_bounds = array<i64: 32, 2>}, {pipeline_mode = #tpu.pipeline_mode<synchronous>, transform_indices = @transform_2, window_bounds = array<i64: 32, 1>}, {pipeline_mode = #tpu.pipeline_mode<synchronous>, transform_indices = @transform_3, window_bounds = array<i64: 32, 32>}, {pipeline_mode = #tpu.pipeline_mode<synchronous>, transform_indices = @transform_4, window_bounds = array<i64: 32, 1>}, {pipeline_mode = #tpu.pipeline_mode<synchronous>, transform_indices = @transform_5, window_bounds = array<i64: 8, 32>}, {pipeline_mode = #tpu.pipeline_mode<synchronous>, transform_indices = @transform_6, window_bounds = array<i64: 8, 1>}, {transform_indices = @transform_7, window_bounds = array<i64: 8, 128>}]} {
    %c0 = arith.constant 0 : index
    %c0_0 = arith.constant 0 : index
    %0 = vector.load %arg1[%c0, %c0_0] : memref<2x128xf32, #tpu.memory_space<vmem>>, vector<2x128xf32>
    %c0_1 = arith.constant 0 : index
    %c0_2 = arith.constant 0 : index
    %1 = vector.load %arg2[%c0_1, %c0_2] : memref<32x2xf32, #tpu.memory_space<vmem>>, vector<32x2xf32>
    %c0_3 = arith.constant 0 : index
    %c0_4 = arith.constant 0 : index
    %2 = vector.load %arg3[%c0_3, %c0_4] : memref<32x1xf32, #tpu.memory_space<vmem>>, vector<32x1xf32>
    %3 = vector.extract_strided_slice %1 {offsets = [0, 0], sizes = [32, 1], strides = [1, 1]} : vector<32x2xf32> to vector<32x1xf32>
    %4 = vector.extract_strided_slice %0 {offsets = [0, 0], sizes = [1, 128], strides = [1, 1]} : vector<2x128xf32> to vector<1x128xf32>
    %5 = vector.broadcast %3 : vector<32x1xf32> to vector<32x128xf32>
    %6 = vector.broadcast %4 : vector<1x128xf32> to vector<32x128xf32>
    %7 = arith.mulf %5, %6 : vector<32x128xf32>
    %8 = vector.extract_strided_slice %1 {offsets = [0, 1], sizes = [32, 1], strides = [1, 1]} : vector<32x2xf32> to vector<32x1xf32>
    %9 = vector.extract_strided_slice %0 {offsets = [1, 0], sizes = [1, 128], strides = [1, 1]} : vector<2x128xf32> to vector<1x128xf32>
    %10 = vector.broadcast %8 : vector<32x1xf32> to vector<32x128xf32>
    %11 = vector.broadcast %9 : vector<1x128xf32> to vector<32x128xf32>
    %12 = arith.mulf %10, %11 : vector<32x128xf32>
    %13 = arith.addf %7, %12 : vector<32x128xf32>
    %14 = vector.broadcast %2 : vector<32x1xf32> to vector<32x128xf32>
    %15 = arith.addf %13, %14 : vector<32x128xf32>
    %cst = arith.constant 0.000000e+00 : f32
    %16 = vector.broadcast %cst : f32 to vector<32x128xf32>
    %17 = arith.maximumf %15, %16 : vector<32x128xf32>
    %c0_5 = arith.constant 0 : index
    %c0_6 = arith.constant 0 : index
    %18 = vector.load %arg4[%c0_5, %c0_6] : memref<32x32xf32, #tpu.memory_space<vmem>>, vector<32x32xf32>
    %c0_7 = arith.constant 0 : index
    %c0_8 = arith.constant 0 : index
    %19 = vector.load %arg5[%c0_7, %c0_8] : memref<32x1xf32, #tpu.memory_space<vmem>>, vector<32x1xf32>
    %cst_9 = arith.constant dense<0.000000e+00> : vector<32x128xf32>
    %20 = tpu.matmul %18, %17, %cst_9 {dimension_numbers = #tpu.dot_dimension_numbers<[1], [0], [0], [1], [0, 0, 1, 1], [], []>} : vector<32x32xf32>, vector<32x128xf32>, vector<32x128xf32> -> vector<32x128xf32>
    %21 = vector.broadcast %19 : vector<32x1xf32> to vector<32x128xf32>
    %22 = arith.addf %20, %21 : vector<32x128xf32>
    %cst_10 = arith.constant 0.000000e+00 : f32
    %23 = vector.broadcast %cst_10 : f32 to vector<32x128xf32>
    %24 = arith.maximumf %22, %23 : vector<32x128xf32>
    %c0_11 = arith.constant 0 : index
    %c0_12 = arith.constant 0 : index
    %25 = vector.load %arg6[%c0_11, %c0_12] : memref<8x32xf32, #tpu.memory_space<vmem>>, vector<8x32xf32>
    %c0_13 = arith.constant 0 : index
    %c0_14 = arith.constant 0 : index
    %26 = vector.load %arg7[%c0_13, %c0_14] : memref<8x1xf32, #tpu.memory_space<vmem>>, vector<8x1xf32>
    %cst_15 = arith.constant dense<0.000000e+00> : vector<8x128xf32>
    %27 = tpu.matmul %25, %24, %cst_15 {dimension_numbers = #tpu.dot_dimension_numbers<[1], [0], [0], [1], [0, 0, 1, 1], [], []>} : vector<8x32xf32>, vector<32x128xf32>, vector<8x128xf32> -> vector<8x128xf32>
    %28 = vector.broadcast %26 : vector<8x1xf32> to vector<8x128xf32>
    %29 = arith.addf %27, %28 : vector<8x128xf32>
    %cst_16 = arith.constant dense<0xFF800000> : vector<128xf32>
    %30 = vector.multi_reduction <maximumf>, %29, %cst_16 [0] : vector<8x128xf32> to vector<128xf32>
    %31 = vector.shape_cast %30 : vector<128xf32> to vector<1x128xf32>
    %32 = vector.broadcast %31 : vector<1x128xf32> to vector<8x128xf32>
    %33 = arith.subf %29, %32 : vector<8x128xf32>
    %34 = math.exp %33 : vector<8x128xf32>
    %cst_17 = arith.constant dense<0.000000e+00> : vector<128xf32>
    %35 = vector.multi_reduction <add>, %34, %cst_17 [0] : vector<8x128xf32> to vector<128xf32>
    %36 = vector.shape_cast %35 : vector<128xf32> to vector<1x128xf32>
    %37 = math.log %36 : vector<1x128xf32>
    %38 = vector.broadcast %37 : vector<1x128xf32> to vector<8x128xf32>
    %39 = arith.subf %33, %38 : vector<8x128xf32>
    %c0_18 = arith.constant 0 : index
    %c0_19 = arith.constant 0 : index
    %40 = vector.load %arg8[%c0_18, %c0_19] : memref<8x128xf32, #tpu.memory_space<vmem>>, vector<8x128xf32>
    tpu.vector_store %arg8[%c0_18, %c0_19], %39 {strides = array<i32>} : memref<8x128xf32, #tpu.memory_space<vmem>>, vector<8x128xf32>,
    return
  }
  func.func @transform_0(%arg0: i32) -> (i32, i32) {
    %c0_i32 = arith.constant 0 : i32
    %c0_i32_0 = arith.constant 0 : i32
    return %c0_i32, %arg0 : i32, i32
  }
  func.func @transform_1(%arg0: i32) -> (i32, i32) {
    %c0_i32 = arith.constant 0 : i32
    %c0_i32_0 = arith.constant 0 : i32
    %c0_i32_1 = arith.constant 0 : i32
    return %c0_i32, %c0_i32_0 : i32, i32
  }
  func.func @transform_2(%arg0: i32) -> (i32, i32) {
    %c0_i32 = arith.constant 0 : i32
    %c0_i32_0 = arith.constant 0 : i32
    %c0_i32_1 = arith.constant 0 : i32
    return %c0_i32, %c0_i32_0 : i32, i32
  }
  func.func @transform_3(%arg0: i32) -> (i32, i32) {
    %c0_i32 = arith.constant 0 : i32
    %c0_i32_0 = arith.constant 0 : i32
    %c0_i32_1 = arith.constant 0 : i32
    return %c0_i32, %c0_i32_0 : i32, i32
  }
  func.func @transform_4(%arg0: i32) -> (i32, i32) {
    %c0_i32 = arith.constant 0 : i32
    %c0_i32_0 = arith.constant 0 : i32
    %c0_i32_1 = arith.constant 0 : i32
    return %c0_i32, %c0_i32_0 : i32, i32
  }
  func.func @transform_5(%arg0: i32) -> (i32, i32) {
    %c0_i32 = arith.constant 0 : i32
    %c0_i32_0 = arith.constant 0 : i32
    %c0_i32_1 = arith.constant 0 : i32
    return %c0_i32, %c0_i32_0 : i32, i32
  }
  func.func @transform_6(%arg0: i32) -> (i32, i32) {
    %c0_i32 = arith.constant 0 : i32
    %c0_i32_0 = arith.constant 0 : i32
    %c0_i32_1 = arith.constant 0 : i32
    return %c0_i32, %c0_i32_0 : i32, i32
  }
  func.func @transform_7(%arg0: i32) -> (i32, i32) {
    %c0_i32 = arith.constant 0 : i32
    %c0_i32_0 = arith.constant 0 : i32
    return %c0_i32, %arg0 : i32, i32
  }
}

</mosaic_0001>

<bundles_post_ra>
// kernel: tpu_custom_call.1
= control target key start
LH: loop header
LB: loop body
LE: loop exit
PB: predicated region body
PF: predicated region fallthrough
CT: control target
= control target key end

     0   :  { %v460_v2 = vmov 1   ;;  %s580_s0 = inlined_call_operand.vmem [shape: f32[2,128], index: 0, kind: input, shape index: {}]   ;;  %s581_s1 = inlined_call_operand.vmem [shape: f32[32,2], index: 1, kind: input, shape index: {}]   ;;  %s582_s2 = inlined_call_operand.vmem [shape: f32[32,1], index: 2, kind: input, shape index: {}]   ;;  %s583_s3 = inlined_call_operand.vmem [shape: f32[32,32], index: 3, kind: input, shape index: {}]   ;;  %s584_s4 = inlined_call_operand.vmem [shape: f32[32,1], index: 4, kind: input, shape index: {}]   ;;  %s585_s5 = inlined_call_operand.vmem [shape: f32[8,32], index: 5, kind: input, shape index: {}]   ;;  %s586_s6 = inlined_call_operand.vmem [shape: f32[8,1], index: 6, kind: input, shape index: {}]   ;;  %s587_s7 = inlined_call_operand.hbm [shape: f32[8,128], index: 7, kind: output, shape index: {}]  }
   0x1   :  { %v30_v0 = vld [vmem:[%s581_s1 + $0x10] sm:$0xff]  ;;  %v28_v1 = vld [vmem:[%s581_s1] sm:$0xff]  ;;  %428 = vset.pattern.permute.xlu0 %v460_v2  ;;  %426 = vset.pattern.permute.xlu1 %v460_v2  ;;  %v29_v3 = vld [vmem:[%s581_s1 + $0x8] sm:$0xff] }
   0x2   :  { %73 = vperm.xlu0 %428, %v30_v0   ;;  %65 = vperm.xlu1 %426, %v28_v1  }
   0x3   :  { %12 = vsyncpa [#allocation3], 0  ;;  %v461_v4 = vmov 0   ;;  %v31_v5 = vld [vmem:[%s581_s1 + $0x18] sm:$0xff]  ;;  %v33_v6 = vld [vmem:[%s582_s2 + $0x8] sm:$0xff]  ;;  %vm148_vm0 = vcmask 261120   ;;  %v56_v16 = vlaneseq }
   0x4   :  { %v32_v7 = vld [vmem:[%s582_s2] sm:$0xff]  ;;  %v34_v9 = vld [vmem:[%s582_s2 + $0x10] sm:$0xff]  ;;  %v35_v11 = vld [vmem:[%s582_s2 + $0x18] sm:$0xff]  ;;  %v462_v60 = vmov 0.0|0.0   ;;  %vm463_vm1 = vmmov 0   ;;  %v464_v61 = vmov 0.0  }
   0x5   :  { %v124_v8 = vld [vmem:[%s584_s4] sm:$0xff]  ;;  %v126_v10 = vld [vmem:[%s584_s4 + $0x10] sm:$0xff]  ;;  %v125_v13 = vld [vmem:[%s584_s4 + $0x8] sm:$0xff]  ;;  %v57_v19 = vshrl.u32 %v56_v16, 7  ;;  %414 = vmatprep.subr.bf16.mxu1 %v462_v60  ;;  %403 = vmatprep.mubr.msk.f32.mxu1 %vm463_vm1, %v464_v61 }
   0x6   :  { %429 = vset.pattern.permute.xlu0 %v461_v4  ;;  %69 = vperm.xlu1 %426, %v29_v3   ;;  %v251_v12 = vld [vmem:[%s586_s6] sm:$0xff]  ;;  %v127_v14 = vld [vmem:[%s584_s4 + $0x18] sm:$0xff]  ;;  %v121_v57 = vld [vmem:[%s583_s3 + $0x8] sm:$0xff] }
   0x7   :  { %38 = vperm.xlu0 %429, %v28_v1   ;;  %v120_v15 = vld [vmem:[%s583_s3] sm:$0xff]  ;;  %v58_v22 = vsub.s32 0, %v57_v19  ;;  %v82_v23 = vsub.s32 1, %v57_v19  ;;  %v122_v58 = vld [vmem:[%s583_s3 + $0x10] sm:$0xff]  ;;  %v123_v59 = vld [vmem:[%s583_s3 + $0x18] sm:$0xff] }
   0x8   :  { %389 = vmatprep.mubr.msk.f32.mxu0 %vm148_vm0, %v120_v15  ;;  %v27_v24 = vld [vmem:[%s580_s0] sm:$0x3] }
   0x9   :  { %v59_v27 = vrot.slane %v27_v24, %v58_v22  ;;  %v83_v28 = vrot.slane %v27_v24, %v82_v23  ;;  %v250_v16 = vld [vmem:[%s585_s5] sm:$0xff]  ;;  %s465_s5 = smov [#allocation2]  }
   0xa   :  { %427 = vset.pattern.permute.xlu1 %v461_v4  ;;  %s355_s10 = sshll.u32 %s465_s5, 4  ;;  %s356_s10 = int_to_ptr.vmem [resolvable:$true] %s355_s10 }
   0xb   :  { %43 = vperm.xlu0 %429, %v29_v3   ;;  %53 = vperm.xlu1 %427, %v31_v5   ;;  %s436_s11 = scalar_lea.vmem %s356_s10, 128  ;;  %p441_p1 = scmp.lt.s32.totalorder %s356_s10, %s356_s10 }
   0xc   :  { %p437_p0 = scmp.ne.s32.totalorder %s356_s10, %s436_s11  ;;  %p442_p2 = scmp.lt.s32.totalorder %s436_s11, %s436_s11 }
   0xe   :  { %p443_p3 = por %p442_p2, %p441_p1 }
   0xf   :  { %48 = vperm.xlu0 %429, %v30_v0   ;;  %430 = vset.pattern.permute.xlu1 %v460_v2 }
  0x10   :  { %77 = vperm.xlu1 %430, %v31_v5   ;;  %p444_p4 = pnand %p443_p3, %p437_p0 }
  0x13   :  { %99 = vperm.xlu0 %429, %v33_v6  }
  0x14   :  { %431 = vset.pattern.permute.xlu1 %v461_v4 }
  0x15   :  { %94 = vperm.xlu1 %431, %v32_v7  }
  0x17   :  { %130 = vperm.xlu0 %429, %v124_v8  }
  0x19   :  { %104 = vperm.xlu1 %431, %v34_v9  }
  0x1b   :  { %140 = vperm.xlu0 %429, %v126_v10  }
  0x1d   :  { %109 = vperm.xlu1 %431, %v35_v11  }
  0x1f   :  { %254 = vperm.xlu0 %429, %v251_v12  }
  0x21   :  { %135 = vperm.xlu1 %431, %v125_v13  }
  0x25   :  { %145 = vperm.xlu1 %431, %v127_v14  }
  0x81   :  { %v66_v17 = vpop.permute.xlu1 %65  ;;  %v74_v18 = vpop.permute.xlu0 %73 }
  0x82   :  { %v84_v34 = vmul.f32 %v83_v28, %v66_v17  ;;  %v86_v42 = vmul.f32 %v83_v28, %v74_v18 }
  0x85   :  { %v70_v20 = vpop.permute.xlu1 %69 }
  0x86   :  { %v39_v21 = vpop.permute.xlu0 %38  ;;  %v85_v31 = vmul.f32 %v83_v28, %v70_v20 }
  0x87   :  { %v60_v32 = vmul.f32 %v59_v27, %v39_v21 }
  0x89   :  { %v88_v38 = vadd.f32 %v84_v34, %v60_v32 }
  0x8a   :  { %v44_v25 = vpop.permute.xlu0 %43  ;;  %v54_v26 = vpop.permute.xlu1 %53 }
  0x8b   :  { %v61_v29 = vmul.f32 %v59_v27, %v44_v25  ;;  %v63_v47 = vmul.f32 %v59_v27, %v54_v26 }
  0x8d   :  { %v89_v35 = vadd.f32 %v85_v31, %v61_v29 }
  0x8e   :  { %v49_v30 = vpop.permute.xlu0 %48 }
  0x8f   :  { %v78_v33 = vpop.permute.xlu1 %77  ;;  %v62_v40 = vmul.f32 %v59_v27, %v49_v30 }
  0x90   :  { %v87_v43 = vmul.f32 %v83_v28, %v78_v33 }
  0x91   :  { %v90_v48 = vadd.f32 %v86_v42, %v62_v40 }
  0x92   :  { %v100_v36 = vpop.permute.xlu0 %99  ;;  %v91_v51 = vadd.f32 %v87_v43, %v63_v47 }
  0x93   :  { %v113_v37 = vadd.f32 %v100_v36, %v89_v35 }
  0x94   :  { %v95_v39 = vpop.permute.xlu1 %94 }
  0x95   :  { %v112_v41 = vadd.f32 %v95_v39, %v88_v38  ;;  %v117_v44 = vmax.f32 %v113_v37, 0.0 }
  0x96   :  { %v131_v63 = vpop.permute.xlu0 %130 }
  0x97   :  { %v116_v45 = vmax.f32 %v112_v41, 0.0 }
  0x98   :  { %v105_v46 = vpop.permute.xlu1 %104 }
  0x99   :  { %v406_v49 = vpack.c.bf16 %v117_v44, %v116_v45  ;;  %v114_v50 = vadd.f32 %v105_v46, %v90_v48 }
  0x9a   :  { %v141_v8 = vpop.permute.xlu0 %140 }
  0x9b   :  { %407 = vmatprep.subr.bf16.mxu0 %v406_v49  ;;  %v118_v54 = vmax.f32 %v114_v50, 0.0 }
  0x9c   :  { %v110_v52 = vpop.permute.xlu1 %109  ;;  %409 = vmatpush3.bf16.msra.mxu0 %v406_v49 }
  0x9d   :  { %v115_v53 = vadd.f32 %v110_v52, %v91_v51 }
  0x9e   :  { %v255_v17 = vpop.permute.xlu0 %254 }
  0x9f   :  { %v119_v55 = vmax.f32 %v115_v53, 0.0 }
  0xa0   :  { %v136_v62 = vpop.permute.xlu1 %135 }
  0xa1   :  { %v410_v56 = vpack.c.bf16 %v119_v55, %v118_v54 }
  0xa3   :  { %411 = vmatprep.subr.bf16.mxu0 %v410_v56 }
  0xa4   :  { %413 = vmatpush3.bf16.msra.mxu0 %v410_v56  ;;  %v146_v5 = vpop.permute.xlu1 %145 }
  0xa7   :  { %390 = vmatmul.mubr.msk.f32.vlgmr.msra.gmra.mrb[0].mxu0 %vm148_vm0, %v121_v57 }
  0xa8   :  { %392 = vmatprep.mubr.msk.f32.mxu0 %vm148_vm0, %v122_v58 }
  0xab   :  { %393 = vmatmul.mubr.msk.f32.gmra.mrb[2].mxu0 %vm148_vm0, %v123_v59 }
 0x17a   :  { %v391_v0 = vpop.f32.mrb[0].mxu0 }
 0x17b   :  { %v233_v1 = vadd.f32 %v391_v0, %v136_v62  ;;  %v227_v2 = vpop.f32.mrb[1].mxu0 }
 0x17c   :  { %v228_v3 = vadd.f32 %v227_v2, %v131_v63 }
 0x17d   :  { %v247_v4 = vmax.f32 %v233_v1, 0.0 }
 0x17e   :  { %v246_v6 = vmax.f32 %v228_v3, 0.0  ;;  %v394_v7 = vpop.f32.mrb[2].mxu0 }
 0x17f   :  { %v243_v9 = vadd.f32 %v394_v7, %v146_v5  ;;  %v237_v10 = vpop.f32.mrb[3].mxu0 }
 0x180   :  { %v238_v11 = vadd.f32 %v237_v10, %v141_v8  ;;  %v415_v12 = vpack.c.bf16 %v247_v4, %v246_v6 }
 0x181   :  { %v249_v13 = vmax.f32 %v243_v9, 0.0 }
 0x182   :  { %v248_v14 = vmax.f32 %v238_v11, 0.0  ;;  %416 = vmatpush3.bf16.msra.mxu1 %v415_v12 }
 0x183   :  { %417 = vmatprep.subr.bf16.mxu1 %v462_v60 }
 0x184   :  { %v418_v15 = vpack.c.bf16 %v249_v13, %v248_v14 }
 0x186   :  { %419 = vmatpush3.bf16.msra.mxu1 %v418_v15 }
 0x189   :  { %404 = vmatmul.mubr.msk.f32.vlgmr.msra.gmra.mrb[0].mxu1 %vm148_vm0, %v250_v16 }
 0x25c   :  { %v326_v18 = vpop.f32.mrb[0].mxu1 }
 0x25d   :  { %v327_v19 = vadd.f32 %v326_v18, %v255_v17  ;;  %v405_v20 = vpop.f32.mrb[1].mxu1 }
 0x25f   :  { %v330_v21 = vrot.slane %v327_v19, 4 }
 0x261   :  { %v331_v22 = vmax.f32 %v327_v19, %v330_v21 }
 0x263   :  { %v332_v23 = vrot.slane %v331_v22, 2 }
 0x265   :  { %v333_v24 = vmax.f32 %v331_v22, %v332_v23 }
 0x267   :  { %v334_v25 = vrot.slane %v333_v24, 1 }
 0x269   :  { %v335_v26 = vmax.f32 %v333_v24, %v334_v25 }
 0x26b   :  { %v336_v27 = vsub.f32 %v327_v19, %v335_v26 }
 0x26d   :  { %v337_v28 = vmul.f32 1.442695, %v336_v27 }
 0x26f   :  { %432 = vpow2.f32 %v337_v28 }
 0x279   :  { %v433_v29 = vpop.eup %432 }
 0x27a   :  { %v339_v30 = vrot.slane %v433_v29, 4 }
 0x27c   :  { %v340_v31 = vadd.f32 %v433_v29, %v339_v30 }
 0x27e   :  { %v341_v32 = vrot.slane %v340_v31, 2 }
 0x280   :  { %v342_v33 = vadd.f32 %v341_v32, %v340_v31 }
 0x282   :  { %v343_v34 = vrot.slane %v342_v33, 1 }
 0x284   :  { %v344_v35 = vadd.f32 %v343_v34, %v342_v33 }
 0x286   :  { %434 = vlog2.f32 %v344_v35 }
 0x290   :  { %v435_v36 = vpop.eup %434 }
 0x291   :  { %v346_v37 = vmul.f32 0.6931472, %v435_v36 }
 0x293   :  { %v347_v38 = vsub.f32 %v336_v27, %v346_v37 }
 0x295   :  { %348 = vst [vmem:[#allocation2] sm:$0xff] %v347_v38 }
 0x296   :  { %447 = shalt.err (!%p444_p4)
}
 0x297   :  { %s448_s14 = scalar_lea.hbm %s587_s7, 128 }
 0x298   :  { %p449_p5 = scmp.ne.s32.totalorder %s587_s7, %s448_s14  ;;  %p452_p6 = scmp.lt.u32.totalorder %s448_s14, %s587_s7 }
 0x29a   :  { %p454_p7 = pnand %p452_p6, %p449_p5 }
 0x29c   :  { %457 = shalt.err (!%p454_p7)
}
 0x29d   :  { %358 = dma.vmem_to_hbm [thread:$0]  %s356_s10, 128, %s587_s7, [#allocation3]  }
 0x29e   :  { %458 = dma.done.wait [#allocation3], 128  }
 0x29f   :  { %459 = vsyncadd [#allocation3], 4294967168 }
 0x2a0   :  { %362 = vsyncpa [#allocation3], 1 }

</bundles_post_ra>
